<compile_context>
chip_gen: v7x
topology: tpu7x:2x2x1
jax: 0.10.0
libtpu: 0.0.40
codegen_flags: <defaults>
</compile_context>

<pallas_src>
import functools

import jax
import jax.numpy as jnp
from jax.experimental import pallas as pl
from jax.experimental.pallas import tpu as pltpu


_BATCH_TILE = 128  # per-grid-step batch tile once M is large enough to matter


# ----------------------------------------------------------------------------
# Kernel: x -> (Linear -> [dropout: identity in eval]) * L -> out
# refs = (x, w0, b0, w1, b1, ..., out). Intermediates are values (vregs only);
# only the final [tile_m, out_dim] result is stored.
# ----------------------------------------------------------------------------
def _fused_mlp_kernel(*refs, num_layers):
    x_ref = refs[0]
    o_ref = refs[-1]
    h = x_ref[...]
    for i in range(num_layers):
        w_ref = refs[1 + 2 * i]
        b_ref = refs[2 + 2 * i]
        h = jnp.dot(h, w_ref[...], preferred_element_type=jnp.float32) + b_ref[...]
        # nn.Dropout(0.15) between hidden layers -> identity (eval mode).
        # TODO(synk): training-mode dropout could use pltpu.prng_seed +
        #             pltpu.stateful_bernoulli inside this same fused kernel.
    o_ref[...] = h.astype(o_ref.dtype)


# ----------------------------------------------------------------------------
# Wrapper. params: list of (w[in,out] f32, b[1,out] f32) — kernel-ready layout.
# x: [M, input_dim] f32. Returns [M, output_dim] f32.
# ----------------------------------------------------------------------------
def _dynamic_net_pallas(params, x):
    num_layers = len(params)
    M, K0 = x.shape
    out_dim = params[-1][0].shape[1]

    flat = []
    for w, b in params:
        flat += [w, b]

    flops = 2 * M * sum(w.shape[0] * w.shape[1] for w, _ in params)
    bytes_accessed = 4 * (x.size + sum(a.size for a in flat) + M * out_dim)
    cost = pl.CostEstimate(flops=flops, transcendentals=0,
                           bytes_accessed=bytes_accessed)

    kernel = functools.partial(_fused_mlp_kernel, num_layers=num_layers)
    out_shape = jax.ShapeDtypeStruct((M, out_dim), x.dtype)

    if M <= _BATCH_TILE:
        # Single block: grid=(), full-extent BlockSpecs (no padding needed when
        # block shape equals the full array shape; Mosaic masks lanes itself).
        in_specs = [pl.BlockSpec(x.shape, lambda: (0, 0))]
        in_specs += [pl.BlockSpec(a.shape, lambda: (0, 0)) for a in flat]
        return pl.pallas_call(
            kernel,
            out_shape=out_shape,
            in_specs=in_specs,
            out_specs=pl.BlockSpec((M, out_dim), lambda: (0, 0)),
            cost_estimate=cost,
        )(x, *flat)

    # Large batch: grid over batch tiles. Weights/biases use index_map (0,0)
    # so they stay resident in VMEM across the grid; x/out stream per tile.
    grid = (pl.cdiv(M, _BATCH_TILE),)
    in_specs = [pl.BlockSpec((_BATCH_TILE, K0), lambda i: (i, 0))]
    in_specs += [pl.BlockSpec(a.shape, lambda i: (0, 0)) for a in flat]
    return pl.pallas_call(
        kernel,
        out_shape=out_shape,
        grid=grid,
        in_specs=in_specs,
        out_specs=pl.BlockSpec((_BATCH_TILE, out_dim), lambda i: (i, 0)),
        compiler_params=pltpu.CompilerParams(
            dimension_semantics=("parallel",)),
        cost_estimate=cost,
    )(x, *flat)


# Jitted public entry point (fuses prep + custom call + result handling).
dynamic_net_pallas = jax.jit(_dynamic_net_pallas)


# ----------------------------------------------------------------------------
# Parameter init matching PyTorch nn.Linear default: U(-1/sqrt(fan_in), +).
# Stored directly in the kernel layout: w [in, out], b [1, out] (prep hoisted
# out of the per-call path).
# ----------------------------------------------------------------------------
def init_dynamic_net(key, input_dim, hidden_dim_list, output_dim):
    full_dims = [input_dim] + list(hidden_dim_list) + [output_dim]
    params = []
    for i in range(len(full_dims) - 1):
        fan_in, fan_out = full_dims[i], full_dims[i + 1]
        key, kw, kb = jax.random.split(key, 3)
        bound = 1.0 / jnp.sqrt(fan_in)
        w = jax.random.uniform(kw, (fan_in, fan_out), jnp.float32, -bound, bound)
        b = jax.random.uniform(kb, (1, fan_out), jnp.float32, -bound, bound)
        params.append((w, b))
    return params


def _ref_forward(params, x):
    h = x
    for w, b in params:
        h = h @ w + b
    return h


if __name__ == "__main__":
    key = jax.random.PRNGKey(0)
    k_params, k_x, k_xl = jax.random.split(key, 3)

    input_dim = 32
    hidden_dim_list = [64, 48]
    output_dim = 8
    batch = 4

    params = init_dynamic_net(k_params, input_dim, hidden_dim_list, output_dim)

    # Small batch: single-block (grid=()) path.
    x = jax.random.normal(k_x, (batch, input_dim), jnp.float32)
    out = jax.block_until_ready(dynamic_net_pallas(params, x))
    ref = _ref_forward(params, x)
    assert out.shape == (batch, output_dim)
    assert jnp.allclose(out, ref, atol=1e-4, rtol=1e-4)

    # Larger batch: exercises the gridded "parallel" batch-tile path.
    x_large = jax.random.normal(k_xl, (256, input_dim), jnp.float32)
    out_large = jax.block_until_ready(dynamic_net_pallas(params, x_large))
    ref_large = _ref_forward(params, x_large)
    assert out_large.shape == (256, output_dim)
    assert jnp.allclose(out_large, ref_large, atol=1e-4, rtol=1e-4)

    print("KERNEL_OK")
</pallas_src>

<mosaic_0001>
module attributes {stable_mosaic.version = 11 : i64} {
  func.func @_fused_mlp_kernel(%arg0: memref<4x32xf32, #tpu.memory_space<vmem>>, %arg1: memref<32x64xf32, #tpu.memory_space<vmem>>, %arg2: memref<1x64xf32, #tpu.memory_space<vmem>>, %arg3: memref<64x48xf32, #tpu.memory_space<vmem>>, %arg4: memref<1x48xf32, #tpu.memory_space<vmem>>, %arg5: memref<48x8xf32, #tpu.memory_space<vmem>>, %arg6: memref<1x8xf32, #tpu.memory_space<vmem>>, %arg7: memref<4x8xf32, #tpu.memory_space<vmem>>) attributes {dimension_semantics = [], scalar_prefetch = 0 : i64, scratch_operands = 0 : i64, tpu.core_type = #tpu.core_type<tc>} {
    %c0 = arith.constant 0 : index
    %c0_0 = arith.constant 0 : index
    %0 = vector.load %arg0[%c0, %c0_0] : memref<4x32xf32, #tpu.memory_space<vmem>>, vector<4x32xf32>
    %c0_1 = arith.constant 0 : index
    %c0_2 = arith.constant 0 : index
    %1 = vector.load %arg1[%c0_1, %c0_2] : memref<32x64xf32, #tpu.memory_space<vmem>>, vector<32x64xf32>
    %cst = arith.constant dense<0.000000e+00> : vector<4x64xf32>
    %2 = tpu.matmul %0, %1, %cst {dimension_numbers = #tpu.dot_dimension_numbers<[1], [0], [0], [1], [0, 0, 1, 1], [], []>} : vector<4x32xf32>, vector<32x64xf32>, vector<4x64xf32> -> vector<4x64xf32>
    %c0_3 = arith.constant 0 : index
    %c0_4 = arith.constant 0 : index
    %3 = vector.load %arg2[%c0_3, %c0_4] : memref<1x64xf32, #tpu.memory_space<vmem>>, vector<1x64xf32>
    %4 = vector.broadcast %3 : vector<1x64xf32> to vector<4x64xf32>
    %5 = arith.addf %2, %4 : vector<4x64xf32>
    %c0_5 = arith.constant 0 : index
    %c0_6 = arith.constant 0 : index
    %6 = vector.load %arg3[%c0_5, %c0_6] : memref<64x48xf32, #tpu.memory_space<vmem>>, vector<64x48xf32>
    %cst_7 = arith.constant dense<0.000000e+00> : vector<4x48xf32>
    %7 = tpu.matmul %5, %6, %cst_7 {dimension_numbers = #tpu.dot_dimension_numbers<[1], [0], [0], [1], [0, 0, 1, 1], [], []>} : vector<4x64xf32>, vector<64x48xf32>, vector<4x48xf32> -> vector<4x48xf32>
    %c0_8 = arith.constant 0 : index
    %c0_9 = arith.constant 0 : index
    %8 = vector.load %arg4[%c0_8, %c0_9] : memref<1x48xf32, #tpu.memory_space<vmem>>, vector<1x48xf32>
    %9 = vector.broadcast %8 : vector<1x48xf32> to vector<4x48xf32>
    %10 = arith.addf %7, %9 : vector<4x48xf32>
    %c0_10 = arith.constant 0 : index
    %c0_11 = arith.constant 0 : index
    %11 = vector.load %arg5[%c0_10, %c0_11] : memref<48x8xf32, #tpu.memory_space<vmem>>, vector<48x8xf32>
    %cst_12 = arith.constant dense<0.000000e+00> : vector<4x8xf32>
    %12 = tpu.matmul %10, %11, %cst_12 {dimension_numbers = #tpu.dot_dimension_numbers<[1], [0], [0], [1], [0, 0, 1, 1], [], []>} : vector<4x48xf32>, vector<48x8xf32>, vector<4x8xf32> -> vector<4x8xf32>
    %c0_13 = arith.constant 0 : index
    %c0_14 = arith.constant 0 : index
    %13 = vector.load %arg6[%c0_13, %c0_14] : memref<1x8xf32, #tpu.memory_space<vmem>>, vector<1x8xf32>
    %14 = vector.broadcast %13 : vector<1x8xf32> to vector<4x8xf32>
    %15 = arith.addf %12, %14 : vector<4x8xf32>
    %c0_15 = arith.constant 0 : index
    %c0_16 = arith.constant 0 : index
    %16 = vector.load %arg7[%c0_15, %c0_16] : memref<4x8xf32, #tpu.memory_space<vmem>>, vector<4x8xf32>
    tpu.vector_store %arg7[%c0_15, %c0_16], %15 {strides = array<i32>} : memref<4x8xf32, #tpu.memory_space<vmem>>, vector<4x8xf32>,
    return
  }
}

</mosaic_0001>

<bundles_post_ra>
// kernel: _dynamic_net_pallas.1
= control target key start
LH: loop header
LB: loop body
LE: loop exit
PB: predicated region body
PF: predicated region fallthrough
CT: control target
= control target key end

     0   :  { %v432_v3 = vmov 0.0|0.0   ;;  %vm433_vm0 = vmmov 0   ;;  %v434_v6 = vmov 0.0   ;;  %s557_s0 = inlined_call_operand.vmem [shape: f32[4,32], index: 0, kind: input, shape index: {}]   ;;  %s558_s1 = inlined_call_operand.vmem [shape: f32[32,64], index: 1, kind: input, shape index: {}]   ;;  %s559_s2 = inlined_call_operand.vmem [shape: f32[1,64], index: 2, kind: input, shape index: {}]   ;;  %s560_s3 = inlined_call_operand.vmem [shape: f32[64,48], index: 3, kind: input, shape index: {}]   ;;  %s561_s4 = inlined_call_operand.vmem [shape: f32[1,48], index: 4, kind: input, shape index: {}]   ;;  %s562_s5 = inlined_call_operand.vmem [shape: f32[48,8], index: 5, kind: input, shape index: {}]   ;;  %s563_s6 = inlined_call_operand.vmem [shape: f32[1,8], index: 6, kind: input, shape index: {}]   ;;  %s564_s7 = inlined_call_operand.hbm [shape: f32[4,8], index: 7, kind: output, shape index: {}]  }
   0x1   :  { %v28_v0 = vld [vmem:[%s558_s1] sm:$0xff]  ;;  %v29_v1 = vld [vmem:[%s558_s1 + $0x8] sm:$0xff]  ;;  %v30_v2 = vld [vmem:[%s558_s1 + $0x10] sm:$0xff]  ;;  %377 = vmatprep.subr.bf16.mxu0 %v432_v3  ;;  %340 = vmatprep.mubr.msk.f32.mxu0 %vm433_vm0, %v434_v6 }
   0x2   :  { %v378_v4 = vpack.c.bf16 %v29_v1, %v28_v0  ;;  %v31_v5 = vld [vmem:[%s558_s1 + $0x18] sm:$0xff]  ;;  %v113_v7 = vld [vmem:[%s560_s3] sm:$0xff]  ;;  %383 = vmatprep.subr.bf16.mxu1 %v432_v3  ;;  %v114_v8 = vld [vmem:[%s560_s3 + $0x8] sm:$0xff]  ;;  %359 = vmatprep.mubr.msk.f32.mxu1 %vm433_vm0, %v434_v6 }
   0x3   :  { %v115_v9 = vld [vmem:[%s560_s3 + $0x10] sm:$0xff]  ;;  %v116_v10 = vld [vmem:[%s560_s3 + $0x18] sm:$0xff]  ;;  %v381_v11 = vpack.c.bf16 %v31_v5, %v30_v2  ;;  %v384_v12 = vpack.c.bf16 %v114_v8, %v113_v7 }
   0x4   :  { %379 = vmatpush3.bf16.msra.mxu0 %v378_v4 }
   0x5   :  { %380 = vmatprep.subr.bf16.mxu0 %v432_v3 }
   0x6   :  { %12 = vsyncpa [#allocation3], 0  ;;  %385 = vmatpush3.bf16.msra.mxu1 %v384_v12  ;;  %v387_v13 = vpack.c.bf16 %v116_v10, %v115_v9  ;;  %v117_v14 = vld [vmem:[%s560_s3 + $0x20] sm:$0xff]  ;;  %v118_v15 = vld [vmem:[%s560_s3 + $0x28] sm:$0xff]  ;;  %vm39_vm1 = vcmask 261120   ;;  %vm128_vm2 = vcmask 523264  }
   0x7   :  { %386 = vmatprep.subr.bf16.mxu1 %v432_v3  ;;  %v27_v16 = vld [vmem:[%s557_s0] sm:$0xf]  ;;  %v390_v17 = vpack.c.bf16 %v118_v15, %v117_v14  ;;  %v119_v18 = vld [vmem:[%s560_s3 + $0x30] sm:$0xff]  ;;  %v120_v19 = vld [vmem:[%s560_s3 + $0x38] sm:$0xff]  ;;  %vm215_vm3 = vcmask 392192   ;;  %s435_s17 = smov [#allocation2]  }
   0x8   :  { %382 = vmatpush3.bf16.msra.mxu0 %v381_v11  ;;  %v393_v20 = vpack.c.bf16 %v120_v19, %v119_v18  ;;  %v202_v21 = vld [vmem:[%s562_s5] sm:$0xff]  ;;  %v203_v22 = vld [vmem:[%s562_s5 + $0x8] sm:$0xff]  ;;  %v204_v23 = vld [vmem:[%s562_s5 + $0x10] sm:$0xff]  ;;  %s297_s18 = sshll.u32 %s435_s17, 4  ;;  %vm289_vm4 = vcmask 60416   ;;  %s298_s18 = int_to_ptr.vmem [resolvable:$true] %s297_s18 }
   0x9   :  { %395 = vmatprep.subr.bf16.mxu0 %v432_v3  ;;  %v396_v24 = vpack.c.bf16 %v203_v22, %v202_v21  ;;  %v205_v25 = vld [vmem:[%s562_s5 + $0x18] sm:$0xff]  ;;  %v305_v27 = vld [vmem:[%s559_s2] ss:$0 sm:$0xff]  ;;  %v207_v32 = vld [vmem:[%s562_s5 + $0x28] sm:$0xff]  ;;  %p413_p1 = scmp.lt.s32.totalorder %s298_s18, %s298_s18 }
   0xa   :  { %388 = vmatpush3.bf16.msra.mxu1 %v387_v13  ;;  %v399_v26 = vpack.c.bf16 %v205_v25, %v204_v23  ;;  %v206_v31 = vld [vmem:[%s562_s5 + $0x20] sm:$0xff]  ;;  %s408_s5 = scalar_lea.vmem %s298_s18, 64 }
   0xb   :  { %341 = vmatmul.mubr.msk.f32.vlgmr.msra.gmra.mrb[0].mxu0 %vm39_vm1, %v27_v16  ;;  %389 = vmatprep.subr.bf16.mxu1 %v432_v3  ;;  %v402_v33 = vpack.c.bf16 %v207_v32, %v206_v31  ;;  %v307_v34 = vld [vmem:[%s561_s4] ss:$0 sm:$0xff]  ;;  %p409_p0 = scmp.ne.s32.totalorder %s298_s18, %s408_s5  ;;  %p414_p2 = scmp.lt.s32.totalorder %s408_s5, %s408_s5 }
   0xc   :  { %374 = vmatprep.mubr.msk.f32.mxu0 %vm433_vm0, %v434_v6  ;;  %397 = vmatpush3.bf16.msra.mxu0 %v396_v24  ;;  %v309_v38 = vld [vmem:[%s563_s6] ss:$0 sm:$0xff] }
   0xd   :  { %398 = vmatprep.subr.bf16.mxu0 %v432_v3  ;;  %p415_p3 = por %p414_p2, %p413_p1 }
   0xe   :  { %391 = vmatpush3.bf16.msra.mxu1 %v390_v17 }
   0xf   :  { %392 = vmatprep.subr.bf16.mxu1 %v432_v3  ;;  %p416_p4 = pnand %p415_p3, %p409_p0 }
  0x10   :  { %400 = vmatpush3.bf16.msra.mxu0 %v399_v26 }
  0x11   :  { %401 = vmatprep.subr.bf16.mxu0 %v432_v3 }
  0x12   :  { %394 = vmatpush3.bf16.msra.mxu1 %v393_v20 }
  0x14   :  { %403 = vmatpush3.bf16.msra.mxu0 %v402_v33 }
  0xde   :  { %v109_v28 = vpop.f32.mrb[0].mxu0 }
  0xdf   :  { %v110_v29 = vadd.f32 %v305_v27, %v109_v28  ;;  %v342_v30 = vpop.f32.mrb[1].mxu0 }
  0xe1   :  { %360 = vmatmul.mubr.msk.f32.vlgmr.msra.gmra.mrb[0].mxu1 %vm128_vm2, %v110_v29 }
 0x1b4   :  { %v198_v35 = vpop.f32.mrb[0].mxu1 }
 0x1b5   :  { %v199_v36 = vadd.f32 %v307_v34, %v198_v35  ;;  %v361_v37 = vpop.f32.mrb[1].mxu1 }
 0x1b7   :  { %375 = vmatmul.mubr.msk.f32.vlgmr.msra.gmra.mrb[2].mxu0 %vm215_vm3, %v199_v36 }
 0x28a   :  { %v285_v39 = vpop.f32.mrb[2].mxu0 }
 0x28b   :  { %v286_v40 = vadd.f32 %v309_v38, %v285_v39  ;;  %v376_v41 = vpop.f32.mrb[3].mxu0 }
 0x28d   :  { %290 = vst.msk [vmem:[#allocation2] sm:$0xf] %vm289_vm4, %v286_v40 }
 0x28e   :  { %419 = shalt.err (!%p416_p4)
}
 0x28f   :  { %s420_s20 = scalar_lea.hbm %s564_s7, 64 }
 0x290   :  { %p421_p5 = scmp.ne.s32.totalorder %s564_s7, %s420_s20  ;;  %p424_p6 = scmp.lt.u32.totalorder %s420_s20, %s564_s7 }
 0x292   :  { %p426_p7 = pnand %p424_p6, %p421_p5 }
 0x294   :  { %429 = shalt.err (!%p426_p7)
}
 0x295   :  { %300 = dma.vmem_to_hbm [thread:$0]  %s298_s18, 64, %s564_s7, [#allocation3]  }
 0x296   :  { %430 = dma.done.wait [#allocation3], 64  }
 0x297   :  { %431 = vsyncadd [#allocation3], 4294967232 }
 0x298   :  { %304 = vsyncpa [#allocation3], 1 }

</bundles_post_ra>
